<compile_context>
chip_gen: v7x
topology: tpu7x:2x2x1
jax: 0.10.0
libtpu: 0.0.40
codegen_flags: <defaults>
</compile_context>

<pallas_src>
import functools

import jax
import jax.numpy as jnp
from jax import lax
from jax.experimental import pallas as pl
from jax.experimental.pallas import tpu as pltpu

LANE = 128
SUBLANE = 8


def gru_net_kernel(x_ref, wih_ref, bih_ref, whh_ref, bhh_ref, wf_ref, bf_ref,
                   out_ref, *, seq_len, batch, h_dim):
    """Single-layer GRU (PyTorch gate order r, z, n) + fused Linear head.

    All gate vectors are packed into 128 lanes (H = h_dim):
        lanes [0:H)    r-gate        lanes [H:2H)   z-gate
        lanes [2H:3H)  n-gate        lanes [3H:4H)  z-gate duplicate
    The hidden state h occupies lanes [2H:3H); whh's only nonzero rows are
    [2H:3H), and wf's only nonzero rows are [2H:3H), so garbage in the other
    lanes of h never contaminates the matmuls.

    x_ref  : (S*Bp, 128)  flattened, batch/feature padded input
    wih_ref: (128, 128)   packed weight_ih^T (b_hr/b_hz folded into bih)
    bih_ref: (1, 128)
    whh_ref: (128, 128)   packed weight_hh^T
    bhh_ref: (1, 128)     only the n-gate lanes (b_hn) are nonzero
    wf_ref : (128, 128)   fused w1/w2 head (rows [2H:3H) valid, col 0 valid)
    bf_ref : (1, 128)
    out_ref: (S*Bp, 128)
    """
    # ---- hoisted input projection: one matmul for all timesteps ------------
    gi_all = jnp.dot(x_ref[...], wih_ref[...],
                     preferred_element_type=jnp.float32) + bih_ref[...]   # (S*Bp, 128)

    whh = whh_ref[...]                                                    # (128, 128)
    # Hoisted broadcast (JAX does not CSE broadcast_in_dim inside loops).
    bhh = jnp.broadcast_to(bhh_ref[...], (batch, LANE))                   # (Bp, 128)

    h = jnp.zeros((batch, LANE), jnp.float32)                             # h0 = 0
    hs = []
    # TODO(synk): on v5e/v6e, persist whh in the MXU staging registers across
    # the unrolled steps via pltpu.matmul_push_rhs / matmul_acc_lhs /
    # matmul_pop instead of re-staging it with jnp.dot every step.
    for t in range(seq_len):
        gi = gi_all[t * batch:(t + 1) * batch, :]                         # (Bp, 128)
        gh = jnp.dot(h, whh, preferred_element_type=jnp.float32) + bhh    # (Bp, 128)
        # One full-width sigmoid gives r (lanes 0:H), z (H:2H) and the z
        # duplicate (3H:4H); the n lanes hold ignored garbage.
        s = jax.nn.sigmoid(gi + gh)
        # Align r and z with the n/h lanes.  shift=2H(=64) is direction
        # agnostic; shift=H(=32) is covered by the z duplicate at 3H.
        r_at_n = pltpu.roll(s, shift=2 * h_dim, axis=1)
        z_at_n = pltpu.roll(s, shift=h_dim, axis=1)
        # n = tanh(W_in x + b_in + r * (W_hn h + b_hn))  (valid in n lanes)
        n = jnp.tanh(gi + r_at_n * gh)
        h = (1.0 - z_at_n) * n + z_at_n * h                               # n lanes valid
        hs.append(h)

    # ---- hoisted, fused output head: one big matmul, lane-dense store ------
    hcat = jnp.concatenate(hs, axis=0)                                    # (S*Bp, 128)
    out_ref[...] = jnp.dot(hcat, wf_ref[...],
                           preferred_element_type=jnp.float32) + bf_ref[...]


def _round_up(x, m):
    return ((x + m - 1) // m) * m


def gru_network_forward(x, params):
    """x: (S, B, I) float32 -> (S, B, O) float32."""
    S, B, I = x.shape
    H = params["weight_hh"].shape[1]          # weight_hh: (3H, H)
    O = params["w2"].shape[0]                 # w2: (O, N)
    assert 4 * H <= LANE, "gate packing assumes 4 * hidden <= 128 lanes"

    Bp = _round_up(B, SUBLANE)                # pad batch to one sublane group
    Ip = LANE                                 # pad input features to one lane group
    Op = LANE                                 # lane-dense output

    wih, whh = params["weight_ih"], params["weight_hh"]
    bih, bhh = params["bias_ih"], params["bias_hh"]
    gw = lambda w, g: w[g * H:(g + 1) * H]    # rows of gate g (r=0, z=1, n=2)
    gb = lambda b, g: b[g * H:(g + 1) * H]

    # ---- packed input projection (I, 3H) -> (Ip, 128); fold b_hr, b_hz -----
    wih_p = jnp.zeros((Ip, LANE), jnp.float32)
    wih_p = wih_p.at[:I, 0 * H:1 * H].set(gw(wih, 0).T)          # r
    wih_p = wih_p.at[:I, 1 * H:2 * H].set(gw(wih, 1).T)          # z
    wih_p = wih_p.at[:I, 2 * H:3 * H].set(gw(wih, 2).T)          # n
    wih_p = wih_p.at[:I, 3 * H:4 * H].set(gw(wih, 1).T)          # z duplicate
    bih_p = jnp.zeros((1, LANE), jnp.float32)
    bih_p = bih_p.at[0, 0 * H:1 * H].set(gb(bih, 0) + gb(bhh, 0))
    bih_p = bih_p.at[0, 1 * H:2 * H].set(gb(bih, 1) + gb(bhh, 1))
    bih_p = bih_p.at[0, 2 * H:3 * H].set(gb(bih, 2))
    bih_p = bih_p.at[0, 3 * H:4 * H].set(gb(bih, 1) + gb(bhh, 1))

    # ---- packed recurrence weight: one 128x128 tile, h rows at [2H:3H) -----
    whh_p = jnp.zeros((LANE, LANE), jnp.float32)
    whh_p = whh_p.at[2 * H:3 * H, 0 * H:1 * H].set(gw(whh, 0).T)
    whh_p = whh_p.at[2 * H:3 * H, 1 * H:2 * H].set(gw(whh, 1).T)
    whh_p = whh_p.at[2 * H:3 * H, 2 * H:3 * H].set(gw(whh, 2).T)
    whh_p = whh_p.at[2 * H:3 * H, 3 * H:4 * H].set(gw(whh, 1).T)
    bhh_p = jnp.zeros((1, LANE), jnp.float32)
    bhh_p = bhh_p.at[0, 2 * H:3 * H].set(gb(bhh, 2))             # only b_hn

    # ---- fused output head: y = h @ (w1^T w2^T) + (b1 w2^T + b2) -----------
    wf = params["w1"].T @ params["w2"].T                         # (H, O)
    bf = params["b1"] @ params["w2"].T + params["b2"]            # (O,)
    wf_p = jnp.zeros((LANE, Op), jnp.float32).at[2 * H:3 * H, :O].set(wf)
    bf_p = jnp.zeros((1, Op), jnp.float32).at[0, :O].set(bf)

    # TODO(synk): on v6e/v7x, store wih_p/whh_p/wf_p (and x) as bf16 and keep
    # f32 accumulation; on v5e keep everything f32 (no bf16 VPU/EUP path).

    # ---- input: pad batch to a sublane group, features to a lane group -----
    xp = jnp.pad(x.astype(jnp.float32), ((0, 0), (0, Bp - B), (0, Ip - I)))
    x2d = xp.reshape(S * Bp, Ip)

    kernel = functools.partial(gru_net_kernel, seq_len=S, batch=Bp, h_dim=H)
    vmem = pl.BlockSpec(memory_space=pltpu.MemorySpace.VMEM)
    # Single invocation; everything fits whole-block in VMEM at these shapes
    # (~300 KB total, far under every generation's VMEM).
    # TODO(synk): for large S*B add a sequence-chunked grid ("arbitrary" time
    # axis) plus a "parallel" batch axis so v7x's second TensorCore is used,
    # sizing blocks against its 64 MiB VMEM via vmem_limit_bytes.
    y = pl.pallas_call(
        kernel,
        out_shape=jax.ShapeDtypeStruct((S * Bp, Op), jnp.float32),
        in_specs=[vmem] * 7,
        out_specs=vmem,
    )(x2d, wih_p, bih_p, whh_p, bhh_p, wf_p, bf_p)

    return y.reshape(S, Bp, Op)[:, :B, :O]


def gru_network_reference(x, params):
    """Pure-JAX reference of the same forward pass (for a sanity check)."""
    S, B, I = x.shape
    H = params["weight_hh"].shape[1]
    wih_t = params["weight_ih"].T
    whh_t = params["weight_hh"].T
    bih = params["bias_ih"]
    bhh = params["bias_hh"]

    def step(h, x_t):
        gi = x_t @ wih_t + bih
        gh = h @ whh_t + bhh
        i_r, i_z, i_n = gi[:, 0:H], gi[:, H:2 * H], gi[:, 2 * H:3 * H]
        h_r, h_z, h_n = gh[:, 0:H], gh[:, H:2 * H], gh[:, 2 * H:3 * H]
        r = jax.nn.sigmoid(i_r + h_r)
        z = jax.nn.sigmoid(i_z + h_z)
        n = jnp.tanh(i_n + r * h_n)
        h_new = (1.0 - z) * n + z * h
        return h_new, h_new

    h0 = jnp.zeros((B, H), jnp.float32)
    _, hs = lax.scan(step, h0, x)           # (S, B, H)
    y = hs.reshape(S * B, H)
    y = y @ params["w1"].T + params["b1"]
    y = y @ params["w2"].T + params["b2"]
    return y.reshape(S, B, -1)


def init_params(key, input_dim, hidden_num, neurons, output_dim):
    """Deterministic init mimicking PyTorch default uniform ranges."""
    ks = jax.random.split(key, 8)
    H, N, O, I = hidden_num, neurons[0], output_dim, input_dim
    s_gru = 1.0 / jnp.sqrt(H)
    s_l1 = 1.0 / jnp.sqrt(H)
    s_l2 = 1.0 / jnp.sqrt(N)
    u = lambda k, shp, s: jax.random.uniform(k, shp, jnp.float32, -s, s)
    return {
        "weight_ih": u(ks[0], (3 * H, I), s_gru),
        "weight_hh": u(ks[1], (3 * H, H), s_gru),
        "bias_ih":   u(ks[2], (3 * H,), s_gru),
        "bias_hh":   u(ks[3], (3 * H,), s_gru),
        "w1":        u(ks[4], (N, H), s_l1),
        "b1":        u(ks[5], (N,), s_l1),
        "w2":        u(ks[6], (O, N), s_l2),
        "b2":        u(ks[7], (O,), s_l2),
    }


if __name__ == "__main__":
    # GRU_network(input_dim=4, hidden_num=32, output_dim=1, neurons=[16])
    # applied to a (seq=8, batch=2, input_dim=4) sequence.
    S, B, I, H, N, O = 8, 2, 4, 32, 16, 1

    key = jax.random.PRNGKey(0)
    k_x, k_p = jax.random.split(key)
    x = jax.random.normal(k_x, (S, B, I), dtype=jnp.float32)
    params = init_params(k_p, I, H, [N], O)

    out = gru_network_forward(x, params)
    out = jax.block_until_ready(out)

    ref = gru_network_reference(x, params)
    assert out.shape == (S, B, O)
    # Note: linear_1/linear_2 are fused in the kernel; differences vs. the
    # two-matmul reference are fp32-rounding level, well inside this tolerance.
    assert jnp.allclose(out, ref, atol=5e-3, rtol=5e-3)

    print("KERNEL_OK")
</pallas_src>

<mosaic_0001>
module attributes {stable_mosaic.version = 11 : i64} {
  func.func @gru_net_kernel(%arg0: memref<64x128xf32, #tpu.memory_space<vmem>>, %arg1: memref<128x128xf32, #tpu.memory_space<vmem>>, %arg2: memref<1x128xf32, #tpu.memory_space<vmem>>, %arg3: memref<128x128xf32, #tpu.memory_space<vmem>>, %arg4: memref<1x128xf32, #tpu.memory_space<vmem>>, %arg5: memref<128x128xf32, #tpu.memory_space<vmem>>, %arg6: memref<1x128xf32, #tpu.memory_space<vmem>>, %arg7: memref<64x128xf32, #tpu.memory_space<vmem>>) attributes {dimension_semantics = [], scalar_prefetch = 0 : i64, scratch_operands = 0 : i64, tpu.core_type = #tpu.core_type<tc>} {
    %c0 = arith.constant 0 : index
    %c0_0 = arith.constant 0 : index
    %0 = vector.load %arg0[%c0, %c0_0] : memref<64x128xf32, #tpu.memory_space<vmem>>, vector<64x128xf32>
    %c0_1 = arith.constant 0 : index
    %c0_2 = arith.constant 0 : index
    %1 = vector.load %arg1[%c0_1, %c0_2] : memref<128x128xf32, #tpu.memory_space<vmem>>, vector<128x128xf32>
    %cst = arith.constant dense<0.000000e+00> : vector<64x128xf32>
    %2 = tpu.matmul %0, %1, %cst {dimension_numbers = #tpu.dot_dimension_numbers<[1], [0], [0], [1], [0, 0, 1, 1], [], []>} : vector<64x128xf32>, vector<128x128xf32>, vector<64x128xf32> -> vector<64x128xf32>
    %c0_3 = arith.constant 0 : index
    %c0_4 = arith.constant 0 : index
    %3 = vector.load %arg2[%c0_3, %c0_4] : memref<1x128xf32, #tpu.memory_space<vmem>>, vector<1x128xf32>
    %4 = vector.broadcast %3 : vector<1x128xf32> to vector<64x128xf32>
    %5 = arith.addf %2, %4 : vector<64x128xf32>
    %c0_5 = arith.constant 0 : index
    %c0_6 = arith.constant 0 : index
    %6 = vector.load %arg3[%c0_5, %c0_6] : memref<128x128xf32, #tpu.memory_space<vmem>>, vector<128x128xf32>
    %c0_7 = arith.constant 0 : index
    %c0_8 = arith.constant 0 : index
    %7 = vector.load %arg4[%c0_7, %c0_8] : memref<1x128xf32, #tpu.memory_space<vmem>>, vector<1x128xf32>
    %8 = vector.shape_cast %7 : vector<1x128xf32> to vector<1x128xf32>
    %9 = vector.broadcast %8 : vector<1x128xf32> to vector<8x128xf32>
    %cst_9 = arith.constant 0.000000e+00 : f32
    %10 = vector.broadcast %cst_9 : f32 to vector<8x128xf32>
    %11 = vector.extract_strided_slice %5 {offsets = [0, 0], sizes = [8, 128], strides = [1, 1]} : vector<64x128xf32> to vector<8x128xf32>
    %cst_10 = arith.constant dense<0.000000e+00> : vector<8x128xf32>
    %12 = tpu.matmul %10, %6, %cst_10 {dimension_numbers = #tpu.dot_dimension_numbers<[1], [0], [0], [1], [0, 0, 1, 1], [], []>} : vector<8x128xf32>, vector<128x128xf32>, vector<8x128xf32> -> vector<8x128xf32>
    %13 = arith.addf %12, %9 : vector<8x128xf32>
    %14 = arith.addf %11, %13 : vector<8x128xf32>
    %15 = arith.negf %14 : vector<8x128xf32>
    %16 = math.exp %15 : vector<8x128xf32>
    %cst_11 = arith.constant 1.000000e+00 : f32
    %17 = vector.broadcast %cst_11 : f32 to vector<8x128xf32>
    %18 = arith.addf %17, %16 : vector<8x128xf32>
    %19 = arith.divf %17, %18 : vector<8x128xf32>
    %c64_i32 = arith.constant 64 : i32
    %20 = tpu.dynamic_rotate %19 by %c64_i32 dim 1 : vector<8x128xf32>, i32 -> vector<8x128xf32>
    %c32_i32 = arith.constant 32 : i32
    %21 = tpu.dynamic_rotate %19 by %c32_i32 dim 1 : vector<8x128xf32>, i32 -> vector<8x128xf32>
    %22 = arith.mulf %20, %13 : vector<8x128xf32>
    %23 = arith.addf %11, %22 : vector<8x128xf32>
    %24 = math.tanh %23 : vector<8x128xf32>
    %cst_12 = arith.constant 1.000000e+00 : f32
    %25 = vector.broadcast %cst_12 : f32 to vector<8x128xf32>
    %26 = arith.subf %25, %21 : vector<8x128xf32>
    %27 = arith.mulf %26, %24 : vector<8x128xf32>
    %28 = arith.mulf %21, %10 : vector<8x128xf32>
    %29 = arith.addf %27, %28 : vector<8x128xf32>
    %30 = vector.extract_strided_slice %5 {offsets = [8, 0], sizes = [8, 128], strides = [1, 1]} : vector<64x128xf32> to vector<8x128xf32>
    %cst_13 = arith.constant dense<0.000000e+00> : vector<8x128xf32>
    %31 = tpu.matmul %29, %6, %cst_13 {dimension_numbers = #tpu.dot_dimension_numbers<[1], [0], [0], [1], [0, 0, 1, 1], [], []>} : vector<8x128xf32>, vector<128x128xf32>, vector<8x128xf32> -> vector<8x128xf32>
    %32 = arith.addf %31, %9 : vector<8x128xf32>
    %33 = arith.addf %30, %32 : vector<8x128xf32>
    %34 = arith.negf %33 : vector<8x128xf32>
    %35 = math.exp %34 : vector<8x128xf32>
    %cst_14 = arith.constant 1.000000e+00 : f32
    %36 = vector.broadcast %cst_14 : f32 to vector<8x128xf32>
    %37 = arith.addf %36, %35 : vector<8x128xf32>
    %38 = arith.divf %36, %37 : vector<8x128xf32>
    %c64_i32_15 = arith.constant 64 : i32
    %39 = tpu.dynamic_rotate %38 by %c64_i32_15 dim 1 : vector<8x128xf32>, i32 -> vector<8x128xf32>
    %c32_i32_16 = arith.constant 32 : i32
    %40 = tpu.dynamic_rotate %38 by %c32_i32_16 dim 1 : vector<8x128xf32>, i32 -> vector<8x128xf32>
    %41 = arith.mulf %39, %32 : vector<8x128xf32>
    %42 = arith.addf %30, %41 : vector<8x128xf32>
    %43 = math.tanh %42 : vector<8x128xf32>
    %cst_17 = arith.constant 1.000000e+00 : f32
    %44 = vector.broadcast %cst_17 : f32 to vector<8x128xf32>
    %45 = arith.subf %44, %40 : vector<8x128xf32>
    %46 = arith.mulf %45, %43 : vector<8x128xf32>
    %47 = arith.mulf %40, %29 : vector<8x128xf32>
    %48 = arith.addf %46, %47 : vector<8x128xf32>
    %49 = vector.extract_strided_slice %5 {offsets = [16, 0], sizes = [8, 128], strides = [1, 1]} : vector<64x128xf32> to vector<8x128xf32>
    %cst_18 = arith.constant dense<0.000000e+00> : vector<8x128xf32>
    %50 = tpu.matmul %48, %6, %cst_18 {dimension_numbers = #tpu.dot_dimension_numbers<[1], [0], [0], [1], [0, 0, 1, 1], [], []>} : vector<8x128xf32>, vector<128x128xf32>, vector<8x128xf32> -> vector<8x128xf32>
    %51 = arith.addf %50, %9 : vector<8x128xf32>
    %52 = arith.addf %49, %51 : vector<8x128xf32>
    %53 = arith.negf %52 : vector<8x128xf32>
    %54 = math.exp %53 : vector<8x128xf32>
    %cst_19 = arith.constant 1.000000e+00 : f32
    %55 = vector.broadcast %cst_19 : f32 to vector<8x128xf32>
    %56 = arith.addf %55, %54 : vector<8x128xf32>
    %57 = arith.divf %55, %56 : vector<8x128xf32>
    %c64_i32_20 = arith.constant 64 : i32
    %58 = tpu.dynamic_rotate %57 by %c64_i32_20 dim 1 : vector<8x128xf32>, i32 -> vector<8x128xf32>
    %c32_i32_21 = arith.constant 32 : i32
    %59 = tpu.dynamic_rotate %57 by %c32_i32_21 dim 1 : vector<8x128xf32>, i32 -> vector<8x128xf32>
    %60 = arith.mulf %58, %51 : vector<8x128xf32>
    %61 = arith.addf %49, %60 : vector<8x128xf32>
    %62 = math.tanh %61 : vector<8x128xf32>
    %cst_22 = arith.constant 1.000000e+00 : f32
    %63 = vector.broadcast %cst_22 : f32 to vector<8x128xf32>
    %64 = arith.subf %63, %59 : vector<8x128xf32>
    %65 = arith.mulf %64, %62 : vector<8x128xf32>
    %66 = arith.mulf %59, %48 : vector<8x128xf32>
    %67 = arith.addf %65, %66 : vector<8x128xf32>
    %68 = vector.extract_strided_slice %5 {offsets = [24, 0], sizes = [8, 128], strides = [1, 1]} : vector<64x128xf32> to vector<8x128xf32>
    %cst_23 = arith.constant dense<0.000000e+00> : vector<8x128xf32>
    %69 = tpu.matmul %67, %6, %cst_23 {dimension_numbers = #tpu.dot_dimension_numbers<[1], [0], [0], [1], [0, 0, 1, 1], [], []>} : vector<8x128xf32>, vector<128x128xf32>, vector<8x128xf32> -> vector<8x128xf32>
    %70 = arith.addf %69, %9 : vector<8x128xf32>
    %71 = arith.addf %68, %70 : vector<8x128xf32>
    %72 = arith.negf %71 : vector<8x128xf32>
    %73 = math.exp %72 : vector<8x128xf32>
    %cst_24 = arith.constant 1.000000e+00 : f32
    %74 = vector.broadcast %cst_24 : f32 to vector<8x128xf32>
    %75 = arith.addf %74, %73 : vector<8x128xf32>
    %76 = arith.divf %74, %75 : vector<8x128xf32>
    %c64_i32_25 = arith.constant 64 : i32
    %77 = tpu.dynamic_rotate %76 by %c64_i32_25 dim 1 : vector<8x128xf32>, i32 -> vector<8x128xf32>
    %c32_i32_26 = arith.constant 32 : i32
    %78 = tpu.dynamic_rotate %76 by %c32_i32_26 dim 1 : vector<8x128xf32>, i32 -> vector<8x128xf32>
    %79 = arith.mulf %77, %70 : vector<8x128xf32>
    %80 = arith.addf %68, %79 : vector<8x128xf32>
    %81 = math.tanh %80 : vector<8x128xf32>
    %cst_27 = arith.constant 1.000000e+00 : f32
    %82 = vector.broadcast %cst_27 : f32 to vector<8x128xf32>
    %83 = arith.subf %82, %78 : vector<8x128xf32>
    %84 = arith.mulf %83, %81 : vector<8x128xf32>
    %85 = arith.mulf %78, %67 : vector<8x128xf32>
    %86 = arith.addf %84, %85 : vector<8x128xf32>
    %87 = vector.extract_strided_slice %5 {offsets = [32, 0], sizes = [8, 128], strides = [1, 1]} : vector<64x128xf32> to vector<8x128xf32>
    %cst_28 = arith.constant dense<0.000000e+00> : vector<8x128xf32>
    %88 = tpu.matmul %86, %6, %cst_28 {dimension_numbers = #tpu.dot_dimension_numbers<[1], [0], [0], [1], [0, 0, 1, 1], [], []>} : vector<8x128xf32>, vector<128x128xf32>, vector<8x128xf32> -> vector<8x128xf32>
    %89 = arith.addf %88, %9 : vector<8x128xf32>
    %90 = arith.addf %87, %89 : vector<8x128xf32>
    %91 = arith.negf %90 : vector<8x128xf32>
    %92 = math.exp %91 : vector<8x128xf32>
    %cst_29 = arith.constant 1.000000e+00 : f32
    %93 = vector.broadcast %cst_29 : f32 to vector<8x128xf32>
    %94 = arith.addf %93, %92 : vector<8x128xf32>
    %95 = arith.divf %93, %94 : vector<8x128xf32>
    %c64_i32_30 = arith.constant 64 : i32
    %96 = tpu.dynamic_rotate %95 by %c64_i32_30 dim 1 : vector<8x128xf32>, i32 -> vector<8x128xf32>
    %c32_i32_31 = arith.constant 32 : i32
    %97 = tpu.dynamic_rotate %95 by %c32_i32_31 dim 1 : vector<8x128xf32>, i32 -> vector<8x128xf32>
    %98 = arith.mulf %96, %89 : vector<8x128xf32>
    %99 = arith.addf %87, %98 : vector<8x128xf32>
    %100 = math.tanh %99 : vector<8x128xf32>
    %cst_32 = arith.constant 1.000000e+00 : f32
    %101 = vector.broadcast %cst_32 : f32 to vector<8x128xf32>
    %102 = arith.subf %101, %97 : vector<8x128xf32>
    %103 = arith.mulf %102, %100 : vector<8x128xf32>
    %104 = arith.mulf %97, %86 : vector<8x128xf32>
    %105 = arith.addf %103, %104 : vector<8x128xf32>
    %106 = vector.extract_strided_slice %5 {offsets = [40, 0], sizes = [8, 128], strides = [1, 1]} : vector<64x128xf32> to vector<8x128xf32>
    %cst_33 = arith.constant dense<0.000000e+00> : vector<8x128xf32>
    %107 = tpu.matmul %105, %6, %cst_33 {dimension_numbers = #tpu.dot_dimension_numbers<[1], [0], [0], [1], [0, 0, 1, 1], [], []>} : vector<8x128xf32>, vector<128x128xf32>, vector<8x128xf32> -> vector<8x128xf32>
    %108 = arith.addf %107, %9 : vector<8x128xf32>
    %109 = arith.addf %106, %108 : vector<8x128xf32>
    %110 = arith.negf %109 : vector<8x128xf32>
    %111 = math.exp %110 : vector<8x128xf32>
    %cst_34 = arith.constant 1.000000e+00 : f32
    %112 = vector.broadcast %cst_34 : f32 to vector<8x128xf32>
    %113 = arith.addf %112, %111 : vector<8x128xf32>
    %114 = arith.divf %112, %113 : vector<8x128xf32>
    %c64_i32_35 = arith.constant 64 : i32
    %115 = tpu.dynamic_rotate %114 by %c64_i32_35 dim 1 : vector<8x128xf32>, i32 -> vector<8x128xf32>
    %c32_i32_36 = arith.constant 32 : i32
    %116 = tpu.dynamic_rotate %114 by %c32_i32_36 dim 1 : vector<8x128xf32>, i32 -> vector<8x128xf32>
    %117 = arith.mulf %115, %108 : vector<8x128xf32>
    %118 = arith.addf %106, %117 : vector<8x128xf32>
    %119 = math.tanh %118 : vector<8x128xf32>
    %cst_37 = arith.constant 1.000000e+00 : f32
    %120 = vector.broadcast %cst_37 : f32 to vector<8x128xf32>
    %121 = arith.subf %120, %116 : vector<8x128xf32>
    %122 = arith.mulf %121, %119 : vector<8x128xf32>
    %123 = arith.mulf %116, %105 : vector<8x128xf32>
    %124 = arith.addf %122, %123 : vector<8x128xf32>
    %125 = vector.extract_strided_slice %5 {offsets = [48, 0], sizes = [8, 128], strides = [1, 1]} : vector<64x128xf32> to vector<8x128xf32>
    %cst_38 = arith.constant dense<0.000000e+00> : vector<8x128xf32>
    %126 = tpu.matmul %124, %6, %cst_38 {dimension_numbers = #tpu.dot_dimension_numbers<[1], [0], [0], [1], [0, 0, 1, 1], [], []>} : vector<8x128xf32>, vector<128x128xf32>, vector<8x128xf32> -> vector<8x128xf32>
    %127 = arith.addf %126, %9 : vector<8x128xf32>
    %128 = arith.addf %125, %127 : vector<8x128xf32>
    %129 = arith.negf %128 : vector<8x128xf32>
    %130 = math.exp %129 : vector<8x128xf32>
    %cst_39 = arith.constant 1.000000e+00 : f32
    %131 = vector.broadcast %cst_39 : f32 to vector<8x128xf32>
    %132 = arith.addf %131, %130 : vector<8x128xf32>
    %133 = arith.divf %131, %132 : vector<8x128xf32>
    %c64_i32_40 = arith.constant 64 : i32
    %134 = tpu.dynamic_rotate %133 by %c64_i32_40 dim 1 : vector<8x128xf32>, i32 -> vector<8x128xf32>
    %c32_i32_41 = arith.constant 32 : i32
    %135 = tpu.dynamic_rotate %133 by %c32_i32_41 dim 1 : vector<8x128xf32>, i32 -> vector<8x128xf32>
    %136 = arith.mulf %134, %127 : vector<8x128xf32>
    %137 = arith.addf %125, %136 : vector<8x128xf32>
    %138 = math.tanh %137 : vector<8x128xf32>
    %cst_42 = arith.constant 1.000000e+00 : f32
    %139 = vector.broadcast %cst_42 : f32 to vector<8x128xf32>
    %140 = arith.subf %139, %135 : vector<8x128xf32>
    %141 = arith.mulf %140, %138 : vector<8x128xf32>
    %142 = arith.mulf %135, %124 : vector<8x128xf32>
    %143 = arith.addf %141, %142 : vector<8x128xf32>
    %144 = vector.extract_strided_slice %5 {offsets = [56, 0], sizes = [8, 128], strides = [1, 1]} : vector<64x128xf32> to vector<8x128xf32>
    %cst_43 = arith.constant dense<0.000000e+00> : vector<8x128xf32>
    %145 = tpu.matmul %143, %6, %cst_43 {dimension_numbers = #tpu.dot_dimension_numbers<[1], [0], [0], [1], [0, 0, 1, 1], [], []>} : vector<8x128xf32>, vector<128x128xf32>, vector<8x128xf32> -> vector<8x128xf32>
    %146 = arith.addf %145, %9 : vector<8x128xf32>
    %147 = arith.addf %144, %146 : vector<8x128xf32>
    %148 = arith.negf %147 : vector<8x128xf32>
    %149 = math.exp %148 : vector<8x128xf32>
    %cst_44 = arith.constant 1.000000e+00 : f32
    %150 = vector.broadcast %cst_44 : f32 to vector<8x128xf32>
    %151 = arith.addf %150, %149 : vector<8x128xf32>
    %152 = arith.divf %150, %151 : vector<8x128xf32>
    %c64_i32_45 = arith.constant 64 : i32
    %153 = tpu.dynamic_rotate %152 by %c64_i32_45 dim 1 : vector<8x128xf32>, i32 -> vector<8x128xf32>
    %c32_i32_46 = arith.constant 32 : i32
    %154 = tpu.dynamic_rotate %152 by %c32_i32_46 dim 1 : vector<8x128xf32>, i32 -> vector<8x128xf32>
    %155 = arith.mulf %153, %146 : vector<8x128xf32>
    %156 = arith.addf %144, %155 : vector<8x128xf32>
    %157 = math.tanh %156 : vector<8x128xf32>
    %cst_47 = arith.constant 1.000000e+00 : f32
    %158 = vector.broadcast %cst_47 : f32 to vector<8x128xf32>
    %159 = arith.subf %158, %154 : vector<8x128xf32>
    %160 = arith.mulf %159, %157 : vector<8x128xf32>
    %161 = arith.mulf %154, %143 : vector<8x128xf32>
    %162 = arith.addf %160, %161 : vector<8x128xf32>
    %163 = tpu.concatenate %29, %48, %67, %86, %105, %124, %143, %162 in 0 : vector<8x128xf32>, vector<8x128xf32>, vector<8x128xf32>, vector<8x128xf32>, vector<8x128xf32>, vector<8x128xf32>, vector<8x128xf32>, vector<8x128xf32> -> vector<64x128xf32>
    %c0_48 = arith.constant 0 : index
    %c0_49 = arith.constant 0 : index
    %164 = vector.load %arg5[%c0_48, %c0_49] : memref<128x128xf32, #tpu.memory_space<vmem>>, vector<128x128xf32>
    %cst_50 = arith.constant dense<0.000000e+00> : vector<64x128xf32>
    %165 = tpu.matmul %163, %164, %cst_50 {dimension_numbers = #tpu.dot_dimension_numbers<[1], [0], [0], [1], [0, 0, 1, 1], [], []>} : vector<64x128xf32>, vector<128x128xf32>, vector<64x128xf32> -> vector<64x128xf32>
    %c0_51 = arith.constant 0 : index
    %c0_52 = arith.constant 0 : index
    %166 = vector.load %arg6[%c0_51, %c0_52] : memref<1x128xf32, #tpu.memory_space<vmem>>, vector<1x128xf32>
    %167 = vector.broadcast %166 : vector<1x128xf32> to vector<64x128xf32>
    %168 = arith.addf %165, %167 : vector<64x128xf32>
    %c0_53 = arith.constant 0 : index
    %c0_54 = arith.constant 0 : index
    %169 = vector.load %arg7[%c0_53, %c0_54] : memref<64x128xf32, #tpu.memory_space<vmem>>, vector<64x128xf32>
    tpu.vector_store %arg7[%c0_53, %c0_54], %168 {strides = array<i32>} : memref<64x128xf32, #tpu.memory_space<vmem>>, vector<64x128xf32>,
    return
  }
}

</mosaic_0001>

<bundles_post_ra>
// kernel: tpu_custom_call.1
= control target key start
LH: loop header
LB: loop body
LE: loop exit
PB: predicated region body
PF: predicated region fallthrough
CT: control target
= control target key end

     0   :  { %12 = vsyncpa [#allocation3], 0  ;;  %s2492_s0 = inlined_call_operand.hbm [shape: f32[64,128], index: 0, kind: input, shape index: {}]   ;;  %s2493_s1 = inlined_call_operand.hbm [shape: f32[128,128], index: 1, kind: input, shape index: {}]   ;;  %s2494_s2 = inlined_call_operand.vmem [shape: f32[1,128], index: 2, kind: input, shape index: {}]   ;;  %s2495_s3 = inlined_call_operand.hbm [shape: f32[128,128], index: 3, kind: input, shape index: {}]   ;;  %s2496_s4 = inlined_call_operand.vmem [shape: f32[1,128], index: 4, kind: input, shape index: {}]   ;;  %s2497_s5 = inlined_call_operand.hbm [shape: f32[128,128], index: 5, kind: input, shape index: {}]   ;;  %s2498_s6 = inlined_call_operand.vmem [shape: f32[1,128], index: 6, kind: input, shape index: {}]   ;;  %s2499_s7 = inlined_call_operand.hbm [shape: f32[64,128], index: 7, kind: output, shape index: {}]  }
   0x1   :  { %13 = vsyncpa [#allocation6], 0 }
   0x2   :  { %14 = vsyncpa [#allocation9], 0 }
   0x3   :  { %15 = vsyncpa [#allocation4], 0  ;;  %s2097_s24 = smov [#allocation5]   ;;  %s2098_s26 = smov [#allocation2]  }
   0x4   :  { %s33_s25 = sshll.u32 %s2097_s24, 4  ;;  %s21_s27 = sshll.u32 %s2098_s26, 4  ;;  %s34_s25 = int_to_ptr.vmem [resolvable:$true] %s33_s25  ;;  %s2149_s27 = int_to_ptr.vmem [resolvable:$true] %s21_s27 }
   0x5   :  { %s1979_s30 = scalar_lea.hbm %s2493_s1, 2048 }
   0x6   :  { %p1980_p0 = scmp.ne.s32.totalorder %s2493_s1, %s1979_s30  ;;  %p1983_p1 = scmp.lt.u32.totalorder %s1979_s30, %s2493_s1 }
   0x8   :  { %p1985_p2 = pnand %p1983_p1, %p1980_p0 }
   0xa   :  { %1988 = shalt.err (!%p1985_p2)
}
   0xb   :  { %s1989_s12 = scalar_lea.vmem %s34_s25, 2048  ;;  %p1994_p4 = scmp.lt.s32.totalorder %s34_s25, %s34_s25 }
   0xc   :  { %p1990_p3 = scmp.ne.s32.totalorder %s34_s25, %s1989_s12  ;;  %p1995_p5 = scmp.lt.s32.totalorder %s1989_s12, %s1989_s12 }
   0xe   :  { %p1996_p6 = por %p1995_p5, %p1994_p4 }
  0x10   :  { %p1997_p7 = pnand %p1996_p6, %p1990_p3 }
  0x12   :  { %2000 = shalt.err (!%p1997_p7)
}
  0x13   :  { %s2099_s13 = smov 128   ;;  %s2100_s14 = smov 8  }
  0x14   :  { %39 = dma.hbm_to_vmem [thread:$0]  %s2493_s1, 2048, %s34_s25, [#allocation6], %s2099_s13, %s2099_s13, %s2100_s14  }
  0x15   :  { %s2001_s19 = scalar_lea.hbm %s2492_s0, 1024 }
  0x16   :  { %p2002_p8 = scmp.ne.s32.totalorder %s2492_s0, %s2001_s19  ;;  %p2005_p9 = scmp.lt.u32.totalorder %s2001_s19, %s2492_s0 }
  0x18   :  { %p2007_p10 = pnand %p2005_p9, %p2002_p8 }
  0x1a   :  { %2010 = shalt.err (!%p2007_p10)
}
  0x1b   :  { %s2011_s24 = scalar_lea.vmem %s2149_s27, 1024  ;;  %p2016_p12 = scmp.lt.s32.totalorder %s2149_s27, %s2149_s27 }
  0x1c   :  { %p2012_p11 = scmp.ne.s32.totalorder %s2149_s27, %s2011_s24  ;;  %p2017_p13 = scmp.lt.s32.totalorder %s2011_s24, %s2011_s24 }
  0x1e   :  { %p2018_p0 = por %p2017_p13, %p2016_p12 }
  0x20   :  { %p2019_p1 = pnand %p2018_p0, %p2012_p11 }
  0x22   :  { %2022 = shalt.err (!%p2019_p1)
}
  0x23   :  { %27 = dma.hbm_to_vmem [thread:$0]  %s2492_s0, 1024, %s2149_s27, [#allocation3], %s2099_s13, %s2099_s13, %s2100_s14  }
  0x24   :  { %s2101_s26 = smov [#allocation7]   ;;  %s2102_s29 = smov [#allocation8]  }
  0x25   :  { %s47_s28 = sshll.u32 %s2101_s26, 4  ;;  %s61_s30 = sshll.u32 %s2102_s29, 4  ;;  %s48_s28 = int_to_ptr.vmem [resolvable:$true] %s47_s28  ;;  %s2186_s30 = int_to_ptr.vmem [resolvable:$true] %s61_s30 }
  0x26   :  { %s2023_s10 = scalar_lea.hbm %s2495_s3, 2048 }
  0x27   :  { %p2024_p2 = scmp.ne.s32.totalorder %s2495_s3, %s2023_s10  ;;  %p2027_p3 = scmp.lt.u32.totalorder %s2023_s10, %s2495_s3 }
  0x29   :  { %p2029_p4 = pnand %p2027_p3, %p2024_p2 }
  0x2b   :  { %2032 = shalt.err (!%p2029_p4)
}
  0x2c   :  { %s2033_s0 = scalar_lea.vmem %s48_s28, 2048  ;;  %p2038_p6 = scmp.lt.s32.totalorder %s48_s28, %s48_s28 }
  0x2d   :  { %p2034_p5 = scmp.ne.s32.totalorder %s48_s28, %s2033_s0  ;;  %p2039_p7 = scmp.lt.s32.totalorder %s2033_s0, %s2033_s0 }
  0x2f   :  { %p2040_p8 = por %p2039_p7, %p2038_p6 }
  0x31   :  { %p2041_p9 = pnand %p2040_p8, %p2034_p5 }
  0x33   :  { %2044 = shalt.err (!%p2041_p9)
}
  0x34   :  { %53 = dma.hbm_to_vmem [thread:$0]  %s2495_s3, 2048, %s48_s28, [#allocation6], %s2099_s13, %s2099_s13, %s2100_s14  }
  0x35   :  { %s2045_s20 = scalar_lea.hbm %s2497_s5, 2048 }
  0x36   :  { %p2046_p10 = scmp.ne.s32.totalorder %s2497_s5, %s2045_s20  ;;  %p2049_p11 = scmp.lt.u32.totalorder %s2045_s20, %s2497_s5 }
  0x38   :  { %p2051_p12 = pnand %p2049_p11, %p2046_p10 }
  0x3a   :  { %2054 = shalt.err (!%p2051_p12)
}
  0x3b   :  { %s2055_s1 = scalar_lea.vmem %s2186_s30, 2048  ;;  %p2060_p0 = scmp.lt.s32.totalorder %s2186_s30, %s2186_s30 }
  0x3c   :  { %p2056_p13 = scmp.ne.s32.totalorder %s2186_s30, %s2055_s1  ;;  %p2061_p1 = scmp.lt.s32.totalorder %s2055_s1, %s2055_s1 }
  0x3e   :  { %p2062_p2 = por %p2061_p1, %p2060_p0 }
  0x40   :  { %p2063_p3 = pnand %p2062_p2, %p2056_p13 }
  0x42   :  { %2066 = shalt.err (!%p2063_p3)
}
  0x43   :  { %67 = dma.hbm_to_vmem [thread:$0]  %s2497_s5, 2048, %s2186_s30, [#allocation9], %s2099_s13, %s2099_s13, %s2100_s14  }
  0x44   :  { %2089 = dma.done.wait [#allocation3], 1024  }
  0x45   :  { %2090 = vsyncadd [#allocation3], 4294966272 }
  0x46   :  { %2091 = dma.done.wait [#allocation6], 4096  }
  0x47   :  { %2092 = vsyncadd [#allocation6], 4294963200 }
  0x48   :  { %2093 = dma.done.wait [#allocation9], 2048  }
  0x49   :  { %2094 = vsyncadd [#allocation9], 4294965248  ;;  %v2103_v0 = vmov 0.0|0.0   ;;  %vm2104_vm0 = vmmov 0   ;;  %v2105_v1 = vmov 0.0   ;;  %v90_v2 = vld [vmem:[#allocation5] sm:$0xff] }
  0x4a   :  { %1695 = vmatprep.subr.bf16.mxu1 %v2103_v0  ;;  %1371 = vmatprep.mubr.msk.f32.mxu1 %vm2104_vm0, %v2105_v1  ;;  %v91_v3 = vld [vmem:[#allocation5 + $0x8] sm:$0xff]  ;;  %v218_v4 = vld [vmem:[#allocation7] sm:$0xff]  ;;  %v92_v7 = vld [vmem:[#allocation5 + $0x10] sm:$0xff] }
  0x4b   :  { %v1663_v5 = vpack.c.bf16 %v91_v3, %v90_v2  ;;  %v219_v6 = vld [vmem:[#allocation7 + $0x8] sm:$0xff]  ;;  %v93_v8 = vld [vmem:[#allocation5 + $0x18] sm:$0xff]  ;;  %v220_v11 = vld [vmem:[#allocation7 + $0x10] sm:$0xff] }
  0x4c   :  { %v2226_v9 = vpack.c.bf16 %v219_v6, %v218_v4  ;;  %v1667_v10 = vpack.c.bf16 %v93_v8, %v92_v7  ;;  %v221_v12 = vld [vmem:[#allocation7 + $0x18] sm:$0xff]  ;;  %v94_v13 = vld [vmem:[#allocation5 + $0x20] sm:$0xff]  ;;  %v95_v14 = vld [vmem:[#allocation5 + $0x28] sm:$0xff] }
  0x4d   :  { %1664 = vmatprep.subr.bf16.mxu0 %v1663_v5  ;;  %v2229_v15 = vpack.c.bf16 %v221_v12, %v220_v11  ;;  %v1671_v16 = vpack.c.bf16 %v95_v14, %v94_v13  ;;  %v222_v17 = vld [vmem:[#allocation7 + $0x20] sm:$0xff]  ;;  %v223_v18 = vld [vmem:[#allocation7 + $0x28] sm:$0xff]  ;;  %v96_v19 = vld [vmem:[#allocation5 + $0x30] sm:$0xff] }
  0x4e   :  { %1666 = vmatpush3.bf16.msra.mxu0 %v1663_v5  ;;  %1697 = vmatpush3.bf16.msra.mxu1 %v2226_v9  ;;  %v97_v20 = vld [vmem:[#allocation5 + $0x38] sm:$0xff]  ;;  %v2233_v21 = vpack.c.bf16 %v223_v18, %v222_v17  ;;  %v224_v23 = vld [vmem:[#allocation7 + $0x30] sm:$0xff]  ;;  %v98_v25 = vld [vmem:[#allocation5 + $0x40] sm:$0xff] }
  0x4f   :  { %1668 = vmatprep.subr.bf16.mxu0 %v1667_v10  ;;  %1698 = vmatprep.subr.bf16.mxu1 %v2103_v0  ;;  %v1675_v22 = vpack.c.bf16 %v97_v20, %v96_v19  ;;  %v225_v24 = vld [vmem:[#allocation7 + $0x38] sm:$0xff]  ;;  %v99_v26 = vld [vmem:[#allocation5 + $0x48] sm:$0xff]  ;;  %v82_v27 = vld [vmem:[#allocation2] sm:$0xff] }
  0x50   :  { %1327 = vmatprep.mubr.f32.mxu0 %v82_v27  ;;  %v2237_v28 = vpack.c.bf16 %v225_v24, %v224_v23  ;;  %v1679_v29 = vpack.c.bf16 %v99_v26, %v98_v25  ;;  %v226_v30 = vld [vmem:[#allocation7 + $0x40] sm:$0xff]  ;;  %v227_v31 = vld [vmem:[#allocation7 + $0x48] sm:$0xff]  ;;  %v100_v32 = vld [vmem:[#allocation5 + $0x50] sm:$0xff] }
  0x51   :  { %v101_v33 = vld [vmem:[#allocation5 + $0x58] sm:$0xff]  ;;  %v2241_v34 = vpack.c.bf16 %v227_v31, %v226_v30  ;;  %v228_v36 = vld [vmem:[#allocation7 + $0x50] sm:$0xff]  ;;  %v102_v38 = vld [vmem:[#allocation5 + $0x60] sm:$0xff] }
  0x52   :  { %1670 = vmatpush3.bf16.msra.mxu0 %v1667_v10  ;;  %1700 = vmatpush3.bf16.msra.mxu1 %v2229_v15  ;;  %v1683_v35 = vpack.c.bf16 %v101_v33, %v100_v32  ;;  %v229_v37 = vld [vmem:[#allocation7 + $0x58] sm:$0xff]  ;;  %v103_v39 = vld [vmem:[#allocation5 + $0x68] sm:$0xff]  ;;  %v230_v42 = vld [vmem:[#allocation7 + $0x60] sm:$0xff] }
  0x53   :  { %1672 = vmatprep.subr.bf16.mxu0 %v1671_v16  ;;  %1701 = vmatprep.subr.bf16.mxu1 %v2103_v0  ;;  %v2245_v40 = vpack.c.bf16 %v229_v37, %v228_v36  ;;  %v1687_v41 = vpack.c.bf16 %v103_v39, %v102_v38  ;;  %v231_v43 = vld [vmem:[#allocation7 + $0x68] sm:$0xff]  ;;  %v104_v44 = vld [vmem:[#allocation5 + $0x70] sm:$0xff]  ;;  %v105_v45 = vld [vmem:[#allocation5 + $0x78] sm:$0xff] }
  0x54   :  { %v2249_v46 = vpack.c.bf16 %v231_v43, %v230_v42  ;;  %v1691_v47 = vpack.c.bf16 %v105_v45, %v104_v44  ;;  %v232_v48 = vld [vmem:[#allocation7 + $0x70] sm:$0xff]  ;;  %v233_v49 = vld [vmem:[#allocation7 + $0x78] sm:$0xff]  ;;  %v83_v51 = vld [vmem:[#allocation2 + $0x8] sm:$0xff] }
  0x55   :  { %v2253_v50 = vpack.c.bf16 %v233_v49, %v232_v48  ;;  %v2297_v52 = vld [vmem:[%s2496_s4] ss:$0 sm:$0xff]  ;;  %v84_v2 = vld [vmem:[#allocation2 + $0x10] sm:$0xff]  ;;  %v85_v3 = vld [vmem:[#allocation2 + $0x18] sm:$0xff]  ;;  %s2107_s4 = smov 32  }
  0x56   :  { %1674 = vmatpush3.bf16.msra.mxu0 %v1671_v16  ;;  %1703 = vmatpush3.bf16.msra.mxu1 %v2233_v21  ;;  %v2302_v53 = vld [vmem:[%s2494_s2] ss:$0 sm:$0xff]  ;;  %v87_v5 = vld [vmem:[#allocation2 + $0x28] sm:$0xff]  ;;  %v88_v7 = vld [vmem:[#allocation2 + $0x30] sm:$0xff]  ;;  %s2106_s2 = smov 64  }
  0x57   :  { %1676 = vmatprep.subr.bf16.mxu0 %v1675_v22  ;;  %1704 = vmatprep.subr.bf16.mxu1 %v2103_v0  ;;  %v86_v4 = vld [vmem:[#allocation2 + $0x20] sm:$0xff]  ;;  %v89_v8 = vld [vmem:[#allocation2 + $0x38] sm:$0xff] }
  0x5a   :  { %1678 = vmatpush3.bf16.msra.mxu0 %v1675_v22  ;;  %1706 = vmatpush3.bf16.msra.mxu1 %v2237_v28 }
  0x5b   :  { %1680 = vmatprep.subr.bf16.mxu0 %v1679_v29  ;;  %1707 = vmatprep.subr.bf16.mxu1 %v2103_v0 }
  0x5e   :  { %1682 = vmatpush3.bf16.msra.mxu0 %v1679_v29  ;;  %1709 = vmatpush3.bf16.msra.mxu1 %v2241_v34 }
  0x5f   :  { %1684 = vmatprep.subr.bf16.mxu0 %v1683_v35  ;;  %1710 = vmatprep.subr.bf16.mxu1 %v2103_v0 }
  0x62   :  { %1686 = vmatpush3.bf16.msra.mxu0 %v1683_v35  ;;  %1712 = vmatpush3.bf16.msra.mxu1 %v2245_v40 }
  0x63   :  { %1688 = vmatprep.subr.bf16.mxu0 %v1687_v41  ;;  %1713 = vmatprep.subr.bf16.mxu1 %v2103_v0 }
  0x66   :  { %1690 = vmatpush3.bf16.msra.mxu0 %v1687_v41  ;;  %1715 = vmatpush3.bf16.msra.mxu1 %v2249_v46 }
  0x67   :  { %1692 = vmatprep.subr.bf16.mxu0 %v1691_v47  ;;  %1716 = vmatprep.subr.bf16.mxu1 %v2103_v0 }
  0x6a   :  { %1694 = vmatpush3.bf16.msra.mxu0 %v1691_v47  ;;  %1718 = vmatpush3.bf16.msra.mxu1 %v2253_v50 }
  0x6b   :  { %1719 = vmatprep.subr.bf16.mxu0 %v2103_v0  ;;  %1743 = vmatprep.subr.bf16.mxu1 %v2103_v0 }
  0x6d   :  { %1328 = vmatmul.mubr.f32.vlgmr.msra.gmra.mrb[0].mxu0 %v83_v51  ;;  %1372 = vmatmul.mubr.f32.vlgmr.msra.gmra.mrb[0].mxu1 %v2105_v1 }
  0x6e   :  { %1721 = vmatpush3.bf16.msra.mxu0 %v2226_v9  ;;  %1745 = vmatpush3.bf16.msra.mxu1 %v2226_v9 }
  0x6f   :  { %1722 = vmatprep.subr.bf16.mxu0 %v2103_v0  ;;  %1746 = vmatprep.subr.bf16.mxu1 %v2103_v0 }
  0x70   :  { %1441 = vmatprep.mubr.msk.f32.mxu1 %vm2104_vm0, %v2105_v1  ;;  %1330 = vmatprep.mubr.f32.mxu0 %v84_v2 }
  0x71   :  { %1331 = vmatmul.mubr.f32.gmra.mrb[2].mxu0 %v85_v3 }
  0x72   :  { %1724 = vmatpush3.bf16.msra.mxu0 %v2229_v15  ;;  %1748 = vmatpush3.bf16.msra.mxu1 %v2229_v15 }
  0x73   :  { %1725 = vmatprep.subr.bf16.mxu0 %v2103_v0  ;;  %1749 = vmatprep.subr.bf16.mxu1 %v2103_v0 }
  0x74   :  { %1333 = vmatprep.mubr.f32.mxu0 %v86_v4 }
  0x75   :  { %1334 = vmatmul.mubr.f32.gmra.mrb[4].mxu0 %v87_v5 }
  0x76   :  { %1727 = vmatpush3.bf16.msra.mxu0 %v2233_v21  ;;  %1751 = vmatpush3.bf16.msra.mxu1 %v2233_v21 }
  0x77   :  { %1728 = vmatprep.subr.bf16.mxu0 %v2103_v0  ;;  %1752 = vmatprep.subr.bf16.mxu1 %v2103_v0 }
  0x78   :  { %1336 = vmatprep.mubr.f32.mxu0 %v88_v7 }
  0x79   :  { %1337 = vmatmul.mubr.f32.gmra.mrb[6].mxu0 %v89_v8 }
  0x7a   :  { %1730 = vmatpush3.bf16.msra.mxu0 %v2237_v28  ;;  %1754 = vmatpush3.bf16.msra.mxu1 %v2237_v28 }
  0x7b   :  { %1731 = vmatprep.subr.bf16.mxu0 %v2103_v0  ;;  %1755 = vmatprep.subr.bf16.mxu1 %v2103_v0 }
  0x7c   :  { %1406 = vmatprep.mubr.msk.f32.mxu0 %vm2104_vm0, %v2105_v1 }
  0x7e   :  { %1733 = vmatpush3.bf16.msra.mxu0 %v2241_v34  ;;  %1757 = vmatpush3.bf16.msra.mxu1 %v2241_v34 }
  0x7f   :  { %1734 = vmatprep.subr.bf16.mxu0 %v2103_v0  ;;  %1758 = vmatprep.subr.bf16.mxu1 %v2103_v0 }
  0x82   :  { %1736 = vmatpush3.bf16.msra.mxu0 %v2245_v40  ;;  %1760 = vmatpush3.bf16.msra.mxu1 %v2245_v40 }
  0x83   :  { %1737 = vmatprep.subr.bf16.mxu0 %v2103_v0  ;;  %1761 = vmatprep.subr.bf16.mxu1 %v2103_v0 }
  0x86   :  { %1739 = vmatpush3.bf16.msra.mxu0 %v2249_v46  ;;  %1763 = vmatpush3.bf16.msra.mxu1 %v2249_v46 }
  0x87   :  { %1740 = vmatprep.subr.bf16.mxu0 %v2103_v0  ;;  %1764 = vmatprep.subr.bf16.mxu1 %v2103_v0 }
  0x8a   :  { %1742 = vmatpush3.bf16.msra.mxu0 %v2253_v50  ;;  %1766 = vmatpush3.bf16.msra.mxu1 %v2253_v50 }
  0x8b   :  { %1767 = vmatprep.subr.bf16.mxu0 %v2103_v0  ;;  %1791 = vmatprep.subr.bf16.mxu1 %v2103_v0 }
 0x140   :  { %v2304_v54 = vpop.f32.mrb[0].mxu0  ;;  %v307_v55 = vpop.f32.mrb[0].mxu1 }
 0x141   :  { %v308_v56 = vadd.f32 %v2297_v52, %v307_v55  ;;  %v179_v57 = vpop.f32.mrb[1].mxu0  ;;  %v1373_v58 = vpop.f32.mrb[1].mxu1  ;;  %v185_v29 = vadd.f32 %v2304_v54, %v2302_v53 }
 0x142   :  { %v180_v59 = vadd.f32 %v2302_v53, %v179_v57 }
 0x144   :  { %v311_v60 = vadd.f32 %v308_v56, %v180_v59  ;;  %v2333_v20 = vpop.f32.mrb[2].mxu0 }
 0x145   :  { %v189_v22 = vpop.f32.mrb[3].mxu0 }
 0x146   :  { %v1102_v61 = vmul.f32 -1.442695, %v311_v60  ;;  %v190_v51 = vadd.f32 %v2302_v53, %v189_v22 }
 0x148   :  { %1931 = vpow2.f32 %v1102_v61  ;;  %v2335_v23 = vpop.f32.mrb[4].mxu0 }
 0x149   :  { %v2337_v24 = vpop.f32.mrb[5].mxu0 }
 0x14c   :  { %v2339_v25 = vpop.f32.mrb[6].mxu0 }
 0x14d   :  { %v2341_v26 = vpop.f32.mrb[7].mxu0 }
 0x152   :  { %v1932_v62 = vpop.eup %1931 }
 0x153   :  { %v315_v63 = vadd.f32 1.0, %v1932_v62 }
 0x155   :  { %1933 = vrcp.f32 %v315_v63 }
 0x15f   :  { %v1934_v6 = vpop.eup %1933 }
 0x160   :  { %318 = vrot.lane.b32.xlu0 %v1934_v6, %s2106_s2 }
 0x164   :  { %320 = vrot.lane.b32.xlu0 %v1934_v6, %s2107_s4 }
 0x1d2   :  { %v319_v10 = vpop.permute.xlu0 %318 }
 0x1d3   :  { %v322_v11 = vmul.f32 %v319_v10, %v308_v56  ;;  %v195_v10 = vadd.f32 %v2333_v20, %v2302_v53 }
 0x1d5   :  { %v323_v12 = vadd.f32 %v322_v11, %v180_v59 }
 0x1d6   :  { %v321_v13 = vpop.permute.xlu0 %320 }
 0x1d7   :  { %1935 = vtanh.f32 %v323_v12  ;;  %v325_v14 = vsub.f32 1.0, %v321_v13  ;;  %v327_v18 = vmul.f32 0.0, %v321_v13 }
 0x1e1   :  { %v1936_v16 = vpop.eup %1935 }
 0x1e2   :  { %v326_v17 = vmul.f32 %v1936_v16, %v325_v14 }
 0x1e4   :  { %v2312_v19 = vadd.f32 %v327_v18, %v326_v17 }
 0x1e6   :  { %1407 = vmatmul.mubr.f32.vlgmr.msra.gmra.mrb[8].mxu0 %v2312_v19 }
 0x1e7   :  { %1769 = vmatpush3.bf16.msra.mxu0 %v2226_v9  ;;  %1476 = vmatprep.mubr.msk.f32.mxu0 %vm2104_vm0, %v2105_v1 }
 0x1e8   :  { %1770 = vmatprep.subr.bf16.mxu0 %v2103_v0 }
 0x1eb   :  { %1772 = vmatpush3.bf16.msra.mxu0 %v2229_v15 }
 0x1ec   :  { %1773 = vmatprep.subr.bf16.mxu0 %v2103_v0 }
 0x1ef   :  { %1775 = vmatpush3.bf16.msra.mxu0 %v2233_v21 }
 0x1f0   :  { %1776 = vmatprep.subr.bf16.mxu0 %v2103_v0 }
 0x1f3   :  { %1778 = vmatpush3.bf16.msra.mxu0 %v2237_v28 }
 0x1f4   :  { %1779 = vmatprep.subr.bf16.mxu0 %v2103_v0 }
 0x1f7   :  { %1781 = vmatpush3.bf16.msra.mxu0 %v2241_v34 }
 0x1f8   :  { %1782 = vmatprep.subr.bf16.mxu0 %v2103_v0 }
 0x1fb   :  { %1784 = vmatpush3.bf16.msra.mxu0 %v2245_v40 }
 0x1fc   :  { %1785 = vmatprep.subr.bf16.mxu0 %v2103_v0 }
 0x1ff   :  { %1787 = vmatpush3.bf16.msra.mxu0 %v2249_v46 }
 0x200   :  { %1788 = vmatprep.subr.bf16.mxu0 %v2103_v0 }
 0x203   :  { %1790 = vmatpush3.bf16.msra.mxu0 %v2253_v50 }
 0x204   :  { %1815 = vmatprep.subr.bf16.mxu0 %v2103_v0 }
 0x2b9   :  { %v395_v27 = vpop.f32.mrb[8].mxu0 }
 0x2ba   :  { %v396_v30 = vadd.f32 %v2297_v52, %v395_v27  ;;  %v1408_v31 = vpop.f32.mrb[9].mxu0 }
 0x2bc   :  { %v399_v32 = vadd.f32 %v396_v30, %v185_v29 }
 0x2be   :  { %v1103_v33 = vmul.f32 -1.442695, %v399_v32 }
 0x2c0   :  { %1937 = vpow2.f32 %v1103_v33 }
 0x2ca   :  { %v1938_v35 = vpop.eup %1937 }
 0x2cb   :  { %v403_v36 = vadd.f32 1.0, %v1938_v35 }
 0x2cd   :  { %1939 = vrcp.f32 %v403_v36 }
 0x2d7   :  { %v1940_v37 = vpop.eup %1939 }
 0x2d8   :  { %406 = vrot.lane.b32.xlu1 %v1940_v37, %s2106_s2 }
 0x2dc   :  { %408 = vrot.lane.b32.xlu1 %v1940_v37, %s2107_s4  ;;  %v200_v37 = vadd.f32 %v2302_v53, %v2337_v24 }
 0x34a   :  { %v407_v38 = vpop.permute.xlu1 %406 }
 0x34b   :  { %v410_v39 = vmul.f32 %v407_v38, %v396_v30 }
 0x34d   :  { %v411_v41 = vadd.f32 %v410_v39, %v185_v29 }
 0x34e   :  { %v409_v42 = vpop.permute.xlu1 %408 }
 0x34f   :  { %1941 = vtanh.f32 %v411_v41  ;;  %v413_v43 = vsub.f32 1.0, %v409_v42  ;;  %v415_v47 = vmul.f32 %v409_v42, %v2312_v19 }
 0x359   :  { %v1942_v44 = vpop.eup %1941 }
 0x35a   :  { %v414_v45 = vmul.f32 %v1942_v44, %v413_v43 }
 0x35c   :  { %v2349_v48 = vadd.f32 %v415_v47, %v414_v45 }
 0x35e   :  { %1442 = vmatmul.mubr.f32.vlgmr.msra.gmra.mrb[2].mxu1 %v2349_v48 }
 0x35f   :  { %1793 = vmatpush3.bf16.msra.mxu1 %v2226_v9  ;;  %1511 = vmatprep.mubr.msk.f32.mxu1 %vm2104_vm0, %v2105_v1 }
 0x360   :  { %1794 = vmatprep.subr.bf16.mxu1 %v2103_v0 }
 0x363   :  { %1796 = vmatpush3.bf16.msra.mxu1 %v2229_v15 }
 0x364   :  { %1797 = vmatprep.subr.bf16.mxu1 %v2103_v0 }
 0x367   :  { %1799 = vmatpush3.bf16.msra.mxu1 %v2233_v21 }
 0x368   :  { %1800 = vmatprep.subr.bf16.mxu1 %v2103_v0 }
 0x36b   :  { %1802 = vmatpush3.bf16.msra.mxu1 %v2237_v28 }
 0x36c   :  { %1803 = vmatprep.subr.bf16.mxu1 %v2103_v0 }
 0x36f   :  { %1805 = vmatpush3.bf16.msra.mxu1 %v2241_v34 }
 0x370   :  { %1806 = vmatprep.subr.bf16.mxu1 %v2103_v0 }
 0x373   :  { %1808 = vmatpush3.bf16.msra.mxu1 %v2245_v40 }
 0x374   :  { %1809 = vmatprep.subr.bf16.mxu1 %v2103_v0 }
 0x377   :  { %1811 = vmatpush3.bf16.msra.mxu1 %v2249_v46 }
 0x378   :  { %1812 = vmatprep.subr.bf16.mxu1 %v2103_v0 }
 0x37b   :  { %1814 = vmatpush3.bf16.msra.mxu1 %v2253_v50 }
 0x37c   :  { %1839 = vmatprep.subr.bf16.mxu1 %v2103_v0 }
 0x431   :  { %v483_v49 = vpop.f32.mrb[2].mxu1 }
 0x432   :  { %v484_v54 = vadd.f32 %v2297_v52, %v483_v49  ;;  %v1443_v55 = vpop.f32.mrb[3].mxu1 }
 0x434   :  { %v487_v56 = vadd.f32 %v484_v54, %v190_v51 }
 0x436   :  { %v1104_v57 = vmul.f32 -1.442695, %v487_v56 }
 0x438   :  { %1943 = vpow2.f32 %v1104_v57 }
 0x442   :  { %v1944_v58 = vpop.eup %1943 }
 0x443   :  { %v491_v59 = vadd.f32 1.0, %v1944_v58 }
 0x445   :  { %1945 = vrcp.f32 %v491_v59 }
 0x44f   :  { %v1946_v60 = vpop.eup %1945 }
 0x450   :  { %496 = vrot.lane.b32.xlu1 %v1946_v60, %s2107_s4  ;;  %494 = vrot.lane.b32.xlu0 %v1946_v60, %s2106_s2  ;;  %v945_v60 = vld [vmem:[#allocation8] sm:$0xff] }
 0x4c2   :  { %v495_v61 = vpop.permute.xlu0 %494  ;;  %v497_v2 = vpop.permute.xlu1 %496 }
 0x4c3   :  { %v498_v62 = vmul.f32 %v495_v61, %v484_v54  ;;  %v501_v3 = vsub.f32 1.0, %v497_v2  ;;  %v503_v5 = vmul.f32 %v497_v2, %v2349_v48  ;;  %v946_v61 = vld [vmem:[#allocation8 + $0x8] sm:$0xff] }
 0x4c5   :  { %v499_v63 = vadd.f32 %v498_v62, %v190_v51 }
 0x4c7   :  { %1947 = vtanh.f32 %v499_v63 }
 0x4d1   :  { %v1948_v4 = vpop.eup %1947 }
 0x4d2   :  { %v502_v6 = vmul.f32 %v1948_v4, %v501_v3  ;;  %v947_v4 = vld [vmem:[#allocation8 + $0x10] sm:$0xff] }
 0x4d4   :  { %v2375_v7 = vadd.f32 %v503_v5, %v502_v6  ;;  %v948_v5 = vld [vmem:[#allocation8 + $0x18] sm:$0xff] }
 0x4d6   :  { %1477 = vmatmul.mubr.f32.vlgmr.msra.gmra.mrb[10].mxu0 %v2375_v7 }
 0x4d7   :  { %1817 = vmatpush3.bf16.msra.mxu0 %v2226_v9  ;;  %1546 = vmatprep.mubr.msk.f32.mxu0 %vm2104_vm0, %v2105_v1 }
 0x4d8   :  { %1818 = vmatprep.subr.bf16.mxu0 %v2103_v0 }
 0x4db   :  { %1820 = vmatpush3.bf16.msra.mxu0 %v2229_v15 }
 0x4dc   :  { %1821 = vmatprep.subr.bf16.mxu0 %v2103_v0 }
 0x4df   :  { %1823 = vmatpush3.bf16.msra.mxu0 %v2233_v21 }
 0x4e0   :  { %1824 = vmatprep.subr.bf16.mxu0 %v2103_v0 }
 0x4e3   :  { %1826 = vmatpush3.bf16.msra.mxu0 %v2237_v28 }
 0x4e4   :  { %1827 = vmatprep.subr.bf16.mxu0 %v2103_v0 }
 0x4e7   :  { %1829 = vmatpush3.bf16.msra.mxu0 %v2241_v34 }
 0x4e8   :  { %1830 = vmatprep.subr.bf16.mxu0 %v2103_v0 }
 0x4eb   :  { %1832 = vmatpush3.bf16.msra.mxu0 %v2245_v40 }
 0x4ec   :  { %1833 = vmatprep.subr.bf16.mxu0 %v2103_v0 }
 0x4ef   :  { %1835 = vmatpush3.bf16.msra.mxu0 %v2249_v46 }
 0x4f0   :  { %1836 = vmatprep.subr.bf16.mxu0 %v2103_v0 }
 0x4f3   :  { %1838 = vmatpush3.bf16.msra.mxu0 %v2253_v50 }
 0x4f4   :  { %1863 = vmatprep.subr.bf16.mxu0 %v2103_v0 }
 0x5a9   :  { %v571_v8 = vpop.f32.mrb[10].mxu0 }
 0x5aa   :  { %v572_v11 = vadd.f32 %v2297_v52, %v571_v8  ;;  %v1478_v12 = vpop.f32.mrb[11].mxu0 }
 0x5ab   :  { %v949_v12 = vld [vmem:[#allocation8 + $0x20] sm:$0xff] }
 0x5ac   :  { %v575_v13 = vadd.f32 %v572_v11, %v195_v10 }
 0x5ae   :  { %v1105_v14 = vmul.f32 -1.442695, %v575_v13  ;;  %v950_v13 = vld [vmem:[#allocation8 + $0x28] sm:$0xff] }
 0x5b0   :  { %1949 = vpow2.f32 %v1105_v14  ;;  %v1895_v14 = vpack.c.bf16 %v950_v13, %v949_v12 }
 0x5ba   :  { %v1950_v16 = vpop.eup %1949 }
 0x5bb   :  { %v579_v17 = vadd.f32 1.0, %v1950_v16  ;;  %v951_v16 = vld [vmem:[#allocation8 + $0x30] sm:$0xff] }
 0x5bd   :  { %1951 = vrcp.f32 %v579_v17  ;;  %v952_v17 = vld [vmem:[#allocation8 + $0x38] sm:$0xff] }
 0x5c7   :  { %v1952_v18 = vpop.eup %1951 }
 0x5c8   :  { %584 = vrot.lane.b32.xlu1 %v1952_v18, %s2107_s4  ;;  %582 = vrot.lane.b32.xlu0 %v1952_v18, %s2106_s2  ;;  %v1899_v18 = vpack.c.bf16 %v952_v17, %v951_v16 }
 0x63a   :  { %v583_v22 = vpop.permute.xlu0 %582  ;;  %v585_v30 = vpop.permute.xlu1 %584 }
 0x63b   :  { %v586_v27 = vmul.f32 %v583_v22, %v572_v11  ;;  %v589_v20 = vsub.f32 1.0, %v585_v30  ;;  %v591_v32 = vmul.f32 %v585_v30, %v2375_v7  ;;  %v1891_v11 = vpack.c.bf16 %v948_v5, %v947_v4  ;;  %v953_v22 = vld [vmem:[#allocation8 + $0x40] sm:$0xff]  ;;  %v955_v30 = vld [vmem:[#allocation8 + $0x50] sm:$0xff] }
 0x63d   :  { %v587_v29 = vadd.f32 %v586_v27, %v195_v10  ;;  %v954_v27 = vld [vmem:[#allocation8 + $0x48] sm:$0xff] }
 0x63f   :  { %1953 = vtanh.f32 %v587_v29  ;;  %v1903_v29 = vpack.c.bf16 %v954_v27, %v953_v22 }
 0x649   :  { %v1954_v31 = vpop.eup %1953 }
 0x64a   :  { %v590_v33 = vmul.f32 %v1954_v31, %v589_v20  ;;  %v956_v20 = vld [vmem:[#allocation8 + $0x58] sm:$0xff] }
 0x64b   :  { %v1907_v31 = vpack.c.bf16 %v956_v20, %v955_v30 }
 0x64c   :  { %v2402_v35 = vadd.f32 %v591_v32, %v590_v33  ;;  %v957_v32 = vld [vmem:[#allocation8 + $0x60] sm:$0xff]  ;;  %v958_v33 = vld [vmem:[#allocation8 + $0x68] sm:$0xff] }
 0x64e   :  { %1512 = vmatmul.mubr.f32.vlgmr.msra.gmra.mrb[4].mxu1 %v2402_v35 }
 0x64f   :  { %1841 = vmatpush3.bf16.msra.mxu1 %v2226_v9  ;;  %1581 = vmatprep.mubr.msk.f32.mxu1 %vm2104_vm0, %v2105_v1 }
 0x650   :  { %1842 = vmatprep.subr.bf16.mxu1 %v2103_v0 }
 0x653   :  { %1844 = vmatpush3.bf16.msra.mxu1 %v2229_v15 }
 0x654   :  { %1845 = vmatprep.subr.bf16.mxu1 %v2103_v0 }
 0x657   :  { %1847 = vmatpush3.bf16.msra.mxu1 %v2233_v21 }
 0x658   :  { %1848 = vmatprep.subr.bf16.mxu1 %v2103_v0 }
 0x65b   :  { %1850 = vmatpush3.bf16.msra.mxu1 %v2237_v28 }
 0x65c   :  { %1851 = vmatprep.subr.bf16.mxu1 %v2103_v0 }
 0x65f   :  { %1853 = vmatpush3.bf16.msra.mxu1 %v2241_v34 }
 0x660   :  { %1854 = vmatprep.subr.bf16.mxu1 %v2103_v0 }
 0x663   :  { %1856 = vmatpush3.bf16.msra.mxu1 %v2245_v40 }
 0x664   :  { %1857 = vmatprep.subr.bf16.mxu1 %v2103_v0 }
 0x667   :  { %1859 = vmatpush3.bf16.msra.mxu1 %v2249_v46 }
 0x668   :  { %1860 = vmatprep.subr.bf16.mxu1 %v2103_v0 }
 0x66b   :  { %1862 = vmatpush3.bf16.msra.mxu1 %v2253_v50 }
 0x721   :  { %v659_v36 = vpop.f32.mrb[4].mxu1 }
 0x722   :  { %v660_v38 = vadd.f32 %v2297_v52, %v659_v36  ;;  %v1513_v39 = vpop.f32.mrb[5].mxu1  ;;  %v959_v36 = vld [vmem:[#allocation8 + $0x70] sm:$0xff] }
 0x724   :  { %v663_v41 = vadd.f32 %v660_v38, %v200_v37 }
 0x726   :  { %v1106_v42 = vmul.f32 -1.442695, %v663_v41  ;;  %v210_v41 = vadd.f32 %v2302_v53, %v2341_v26 }
 0x728   :  { %1955 = vpow2.f32 %v1106_v42 }
 0x732   :  { %v1956_v43 = vpop.eup %1955 }
 0x733   :  { %v667_v44 = vadd.f32 1.0, %v1956_v43 }
 0x735   :  { %1957 = vrcp.f32 %v667_v44 }
 0x73f   :  { %v1958_v45 = vpop.eup %1957 }
 0x740   :  { %672 = vrot.lane.b32.xlu1 %v1958_v45, %s2107_s4  ;;  %670 = vrot.lane.b32.xlu0 %v1958_v45, %s2106_s2 }
 0x7b2   :  { %v671_v47 = vpop.permute.xlu0 %670  ;;  %v673_v54 = vpop.permute.xlu1 %672 }
 0x7b3   :  { %v674_v49 = vmul.f32 %v671_v47, %v660_v38  ;;  %v677_v24 = vsub.f32 1.0, %v673_v54  ;;  %v679_v56 = vmul.f32 %v673_v54, %v2402_v35 }
 0x7b5   :  { %v675_v51 = vadd.f32 %v674_v49, %v200_v37  ;;  %v960_v37 = vld [vmem:[#allocation8 + $0x78] sm:$0xff] }
 0x7b6   :  { %v1915_v38 = vpack.c.bf16 %v960_v37, %v959_v36 }
 0x7b7   :  { %1959 = vtanh.f32 %v675_v51 }
 0x7c1   :  { %v1960_v55 = vpop.eup %1959 }
 0x7c2   :  { %v678_v57 = vmul.f32 %v1960_v55, %v677_v24 }
 0x7c4   :  { %v2428_v58 = vadd.f32 %v679_v56, %v678_v57 }
 0x7c6   :  { %1547 = vmatmul.mubr.f32.vlgmr.msra.gmra.mrb[12].mxu0 %v2428_v58 }
 0x7c7   :  { %1865 = vmatpush3.bf16.msra.mxu0 %v2226_v9  ;;  %1616 = vmatprep.mubr.msk.f32.mxu0 %vm2104_vm0, %v2105_v1  ;;  %v205_v9 = vadd.f32 %v2335_v23, %v2302_v53 }
 0x7c8   :  { %1866 = vmatprep.subr.bf16.mxu0 %v2103_v0 }
 0x7cb   :  { %1868 = vmatpush3.bf16.msra.mxu0 %v2229_v15 }
 0x7cc   :  { %1869 = vmatprep.subr.bf16.mxu0 %v2103_v0 }
 0x7cf   :  { %1871 = vmatpush3.bf16.msra.mxu0 %v2233_v21 }
 0x7d0   :  { %1872 = vmatprep.subr.bf16.mxu0 %v2103_v0 }
 0x7d3   :  { %1874 = vmatpush3.bf16.msra.mxu0 %v2237_v28 }
 0x7d4   :  { %1875 = vmatprep.subr.bf16.mxu0 %v2103_v0 }
 0x7d7   :  { %1877 = vmatpush3.bf16.msra.mxu0 %v2241_v34 }
 0x7d8   :  { %1878 = vmatprep.subr.bf16.mxu0 %v2103_v0 }
 0x7db   :  { %1880 = vmatpush3.bf16.msra.mxu0 %v2245_v40 }
 0x7dc   :  { %1881 = vmatprep.subr.bf16.mxu0 %v2103_v0 }
 0x7df   :  { %1883 = vmatpush3.bf16.msra.mxu0 %v2249_v46  ;;  %v1887_v46 = vpack.c.bf16 %v946_v61, %v945_v60 }
 0x7e0   :  { %1884 = vmatprep.subr.bf16.mxu0 %v2103_v0 }
 0x7e1   :  { %1888 = vmatprep.subr.bf16.mxu1 %v1887_v46 }
 0x7e3   :  { %1886 = vmatpush3.bf16.msra.mxu0 %v2253_v50 }
 0x899   :  { %v747_v1 = vpop.f32.mrb[12].mxu0 }
 0x89a   :  { %v748_v15 = vadd.f32 %v2297_v52, %v747_v1  ;;  %v1548_v21 = vpop.f32.mrb[13].mxu0 }
 0x89c   :  { %v751_v28 = vadd.f32 %v748_v15, %v205_v9 }
 0x89e   :  { %v1107_v34 = vmul.f32 -1.442695, %v751_v28 }
 0x8a0   :  { %1961 = vpow2.f32 %v1107_v34 }
 0x8aa   :  { %v1962_v59 = vpop.eup %1961 }
 0x8ab   :  { %v755_v40 = vadd.f32 1.0, %v1962_v59 }
 0x8ad   :  { %1963 = vrcp.f32 %v755_v40 }
 0x8b7   :  { %v1964_v0 = vpop.eup %1963 }
 0x8b8   :  { %760 = vrot.lane.b32.xlu1 %v1964_v0, %s2107_s4  ;;  %758 = vrot.lane.b32.xlu0 %v1964_v0, %s2106_s2 }
 0x92a   :  { %v759_v50 = vpop.permute.xlu0 %758  ;;  %v761_v63 = vpop.permute.xlu1 %760 }
 0x92b   :  { %v762_v23 = vmul.f32 %v759_v50, %v748_v15  ;;  %v765_v2 = vsub.f32 1.0, %v761_v63  ;;  %v767_v6 = vmul.f32 %v761_v63, %v2428_v58 }
 0x92d   :  { %v763_v62 = vadd.f32 %v762_v23, %v205_v9  ;;  %v215_v23 = vadd.f32 %v2339_v25, %v2302_v53 }
 0x92f   :  { %1965 = vtanh.f32 %v763_v62 }
 0x939   :  { %v1966_v3 = vpop.eup %1965 }
 0x93a   :  { %v766_v8 = vmul.f32 %v1966_v3, %v765_v2 }
 0x93c   :  { %v2454_v10 = vadd.f32 %v767_v6, %v766_v8 }
 0x93e   :  { %1582 = vmatmul.mubr.f32.vlgmr.msra.gmra.mrb[6].mxu1 %v2454_v10 }
 0x93f   :  { %1890 = vmatpush3.bf16.msra.mxu1 %v1887_v46  ;;  %1651 = vmatprep.mubr.f32.mxu1 %v2312_v19  ;;  %v1911_v19 = vpack.c.bf16 %v958_v33, %v957_v32 }
 0x940   :  { %1892 = vmatprep.subr.bf16.mxu1 %v1891_v11 }
 0x943   :  { %1894 = vmatpush3.bf16.msra.mxu1 %v1891_v11 }
 0x944   :  { %1896 = vmatprep.subr.bf16.mxu1 %v1895_v14 }
 0x947   :  { %1898 = vmatpush3.bf16.msra.mxu1 %v1895_v14 }
 0x948   :  { %1900 = vmatprep.subr.bf16.mxu1 %v1899_v18 }
 0x94b   :  { %1902 = vmatpush3.bf16.msra.mxu1 %v1899_v18 }
 0x94c   :  { %1904 = vmatprep.subr.bf16.mxu1 %v1903_v29 }
 0x94f   :  { %1906 = vmatpush3.bf16.msra.mxu1 %v1903_v29 }
 0x950   :  { %1908 = vmatprep.subr.bf16.mxu1 %v1907_v31 }
 0x953   :  { %1910 = vmatpush3.bf16.msra.mxu1 %v1907_v31 }
 0x954   :  { %1912 = vmatprep.subr.bf16.mxu1 %v1911_v19 }
 0x957   :  { %1914 = vmatpush3.bf16.msra.mxu1 %v1911_v19 }
 0x958   :  { %1916 = vmatprep.subr.bf16.mxu1 %v1915_v38 }
 0x95b   :  { %1918 = vmatpush3.bf16.msra.mxu1 %v1915_v38 }
 0x95e   :  { %1652 = vmatmul.mubr.f32.vlgmr.msra.gmra.mrb[8].mxu1 %v2349_v48 }
 0x95f   :  { %1654 = vmatprep.mubr.f32.mxu1 %v2375_v7 }
 0x962   :  { %1655 = vmatmul.mubr.f32.gmra.mrb[10].mxu1 %v2402_v35  ;;  %v1110_v35 = vld [vmem:[%s2498_s6] ss:$0 sm:$0xff]  ;;  %s2108_s6 = smov [#allocation10]  }
 0x963   :  { %1657 = vmatprep.mubr.f32.mxu1 %v2428_v58  ;;  %s1086_s9 = sshll.u32 %s2108_s6, 4  ;;  %s1087_s9 = int_to_ptr.vmem [resolvable:$true] %s1086_s9 }
 0x964   :  { %s2067_s10 = scalar_lea.vmem %s1087_s9, 1024  ;;  %p2072_p5 = scmp.lt.s32.totalorder %s1087_s9, %s1087_s9 }
 0x965   :  { %p2068_p4 = scmp.ne.s32.totalorder %s1087_s9, %s2067_s10  ;;  %p2073_p6 = scmp.lt.s32.totalorder %s2067_s10, %s2067_s10 }
 0x966   :  { %1658 = vmatmul.mubr.f32.gmra.mrb[12].mxu1 %v2454_v10 }
 0x967   :  { %p2074_p7 = por %p2073_p6, %p2072_p5 }
 0x969   :  { %p2075_p8 = pnand %p2074_p7, %p2068_p4 }
 0xa11   :  { %v835_v39 = vpop.f32.mrb[6].mxu1 }
 0xa12   :  { %v836_v42 = vadd.f32 %v2297_v52, %v835_v39  ;;  %v1583_v43 = vpop.f32.mrb[7].mxu1 }
 0xa14   :  { %v839_v44 = vadd.f32 %v836_v42, %v210_v41 }
 0xa16   :  { %v1108_v45 = vmul.f32 -1.442695, %v839_v44 }
 0xa18   :  { %1967 = vpow2.f32 %v1108_v45 }
 0xa22   :  { %v1968_v47 = vpop.eup %1967 }
 0xa23   :  { %v843_v48 = vadd.f32 1.0, %v1968_v47 }
 0xa25   :  { %1969 = vrcp.f32 %v843_v48 }
 0xa2f   :  { %v1970_v7 = vpop.eup %1969 }
 0xa30   :  { %848 = vrot.lane.b32.xlu1 %v1970_v7, %s2107_s4  ;;  %846 = vrot.lane.b32.xlu0 %v1970_v7, %s2106_s2 }
 0xa31   :  { %v1653_v49 = vpop.f32.mrb[8].mxu1 }
 0xa32   :  { %v1040_v26 = vadd.f32 %v1653_v49, %v1110_v35  ;;  %v1034_v51 = vpop.f32.mrb[9].mxu1 }
 0xa33   :  { %v1035_v54 = vadd.f32 %v1110_v35, %v1034_v51 }
 0xa34   :  { %1074 = vst [vmem:[#allocation10 + $0x8] sm:$0xff] %v1040_v26 }
 0xa35   :  { %1073 = vst [vmem:[#allocation10] sm:$0xff] %v1035_v54  ;;  %v1656_v24 = vpop.f32.mrb[10].mxu1 }
 0xa36   :  { %v1050_v55 = vadd.f32 %v1656_v24, %v1110_v35  ;;  %v1044_v56 = vpop.f32.mrb[11].mxu1 }
 0xa37   :  { %v1045_v57 = vadd.f32 %v1110_v35, %v1044_v56 }
 0xa38   :  { %1076 = vst [vmem:[#allocation10 + $0x18] sm:$0xff] %v1050_v55 }
 0xa39   :  { %1075 = vst [vmem:[#allocation10 + $0x10] sm:$0xff] %v1045_v57  ;;  %v1659_v58 = vpop.f32.mrb[12].mxu1 }
 0xa3a   :  { %v1060_v1 = vadd.f32 %v1659_v58, %v1110_v35  ;;  %v1054_v9 = vpop.f32.mrb[13].mxu1 }
 0xa3b   :  { %v1055_v15 = vadd.f32 %v1110_v35, %v1054_v9 }
 0xa3c   :  { %1078 = vst [vmem:[#allocation10 + $0x28] sm:$0xff] %v1060_v1 }
 0xa3d   :  { %1077 = vst [vmem:[#allocation10 + $0x20] sm:$0xff] %v1055_v15 }
 0xaa2   :  { %v847_v21 = vpop.permute.xlu0 %846  ;;  %v849_v59 = vpop.permute.xlu1 %848 }
 0xaa3   :  { %v850_v28 = vmul.f32 %v847_v21, %v836_v42  ;;  %v853_v40 = vsub.f32 1.0, %v849_v59  ;;  %v855_v61 = vmul.f32 %v849_v59, %v2454_v10 }
 0xaa5   :  { %v851_v34 = vadd.f32 %v850_v28, %v210_v41 }
 0xaa7   :  { %1971 = vtanh.f32 %v851_v34 }
 0xab1   :  { %v1972_v60 = vpop.eup %1971 }
 0xab2   :  { %v854_v46 = vmul.f32 %v1972_v60, %v853_v40 }
 0xab4   :  { %v856_v0 = vadd.f32 %v855_v61, %v854_v46 }
 0xab6   :  { %1617 = vmatmul.mubr.f32.vlgmr.msra.gmra.mrb[14].mxu0 %v856_v0  ;;  %1660 = vmatprep.mubr.f32.mxu1 %v856_v0 }
 0xb89   :  { %v923_v50 = vpop.f32.mrb[14].mxu0 }
 0xb8a   :  { %v924_v62 = vadd.f32 %v2297_v52, %v923_v50  ;;  %v1618_v63 = vpop.f32.mrb[15].mxu0 }
 0xb8c   :  { %v927_v2 = vadd.f32 %v924_v62, %v215_v23 }
 0xb8e   :  { %v1109_v3 = vmul.f32 -1.442695, %v927_v2 }
 0xb90   :  { %1973 = vpow2.f32 %v1109_v3 }
 0xb9a   :  { %v1974_v4 = vpop.eup %1973 }
 0xb9b   :  { %v931_v5 = vadd.f32 1.0, %v1974_v4 }
 0xb9d   :  { %1975 = vrcp.f32 %v931_v5 }
 0xba7   :  { %v1976_v6 = vpop.eup %1975 }
 0xba8   :  { %936 = vrot.lane.b32.xlu1 %v1976_v6, %s2107_s4  ;;  %934 = vrot.lane.b32.xlu0 %v1976_v6, %s2106_s2 }
 0xc1a   :  { %v935_v8 = vpop.permute.xlu0 %934  ;;  %v937_v12 = vpop.permute.xlu1 %936 }
 0xc1b   :  { %v938_v10 = vmul.f32 %v935_v8, %v924_v62  ;;  %v941_v53 = vsub.f32 1.0, %v937_v12  ;;  %v943_v52 = vmul.f32 %v937_v12, %v856_v0 }
 0xc1d   :  { %v939_v11 = vadd.f32 %v938_v10, %v215_v23 }
 0xc1f   :  { %1977 = vtanh.f32 %v939_v11 }
 0xc29   :  { %v1978_v25 = vpop.eup %1977 }
 0xc2a   :  { %v942_v13 = vmul.f32 %v1978_v25, %v941_v53 }
 0xc2c   :  { %v944_v14 = vadd.f32 %v943_v52, %v942_v13 }
 0xc2e   :  { %1661 = vmatmul.mubr.f32.gmra.mrb[14].mxu1 %v944_v14 }
 0xd01   :  { %v1662_v16 = vpop.f32.mrb[14].mxu1 }
 0xd02   :  { %v1070_v17 = vadd.f32 %v1662_v16, %v1110_v35  ;;  %v1064_v18 = vpop.f32.mrb[15].mxu1 }
 0xd03   :  { %v1065_v22 = vadd.f32 %v1110_v35, %v1064_v18 }
 0xd04   :  { %1080 = vst [vmem:[#allocation10 + $0x38] sm:$0xff] %v1070_v17 }
 0xd05   :  { %1079 = vst [vmem:[#allocation10 + $0x30] sm:$0xff] %v1065_v22 }
 0xd06   :  { %2078 = shalt.err (!%p2075_p8)
}
 0xd07   :  { %s2079_s15 = scalar_lea.hbm %s2499_s7, 1024 }
 0xd08   :  { %p2080_p9 = scmp.ne.s32.totalorder %s2499_s7, %s2079_s15  ;;  %p2083_p10 = scmp.lt.u32.totalorder %s2079_s15, %s2499_s7 }
 0xd0a   :  { %p2085_p11 = pnand %p2083_p10, %p2080_p9 }
 0xd0c   :  { %2088 = shalt.err (!%p2085_p11)
}
 0xd0d   :  { %1092 = dma.vmem_to_hbm [thread:$0]  %s1087_s9, 1024, %s2499_s7, [#allocation4], %s2099_s13, %s2099_s13, %s2100_s14  }
 0xd0e   :  { %2095 = dma.done.wait [#allocation4], 1024  }
 0xd0f   :  { %2096 = vsyncadd [#allocation4], 4294966272 }
 0xd10   :  { %1096 = vsyncpa [#allocation3], 1 }
 0xd11   :  { %1097 = vsyncpa [#allocation6], 1 }
 0xd12   :  { %1098 = vsyncpa [#allocation9], 1 }
 0xd13   :  { %1099 = vsyncpa [#allocation4], 1 }

</bundles_post_ra>
